<compile_context>
chip_gen: v7x
topology: tpu7x:2x2x1
jax: 0.10.0
libtpu: 0.0.40
codegen_flags: <defaults>
</compile_context>

<pallas_src>
import functools

import jax
import jax.numpy as jnp
import numpy as np
from jax.experimental import pallas as pl
from jax.experimental.pallas import tpu as pltpu

TYPE_LIST = ["classify", "nli", "generate", "mrc", "anaphora_resolution"]
NUM_SHARED = 3
NUM_GATES = NUM_SHARED + 1  # 1 routed expert + 3 shared experts


def _moe_kernel(order_ref, sexp_ref, h_ref, wi_ref, wo_ref, gw1_ref, gw2_ref, o_ref,
                *, d_ff):
    """One (sorted) batch element per grid step.

    h_ref   : [1, S, D]        f32   hidden states for this batch element
    wi_ref  : [1, D, 4*d_ff]   bf16  fused wi   (routed | s0 | s1 | s2)
    wo_ref  : [1, 4*d_ff, D]   bf16  fused wo   (routed | s0 | s1 | s2)
    gw1_ref : [4*D, D]         f32   gate Linear1
    gw2_ref : [D, 4]           f32   gate Linear2
    o_ref   : [1, S, D]        f32
    """
    del order_ref, sexp_ref  # routing/permutation consumed by the index_maps (SMEM)
    h = h_ref[0].astype(jnp.bfloat16)                # [S, D]   cast in-kernel (free VPU)
    wi = wi_ref[0]                                   # [D, 4*d_ff]
    wo = wo_ref[0]                                   # [4*d_ff, D]

    # T5DenseActDense up-projection for all 4 experts in one MXU pass (N = 4*d_ff).
    hpre = jnp.dot(h, wi, preferred_element_type=jnp.float32)       # [S, 4*d_ff] f32
    hact = jnp.maximum(hpre, 0.0).astype(jnp.bfloat16)              # ReLU, bf16 operand

    # Down-projection per expert chunk against the wo tiles already in VMEM.
    # partials[c] is that expert's full T5DenseActDense output (f32 accumulation).
    partials = []
    for c in range(NUM_GATES):
        pc = jnp.dot(hact[:, c * d_ff:(c + 1) * d_ff],
                     wo[c * d_ff:(c + 1) * d_ff, :],
                     preferred_element_type=jnp.float32)            # [S, D] f32
        partials.append(pc)

    # Gate logits from the experts' first-token outputs (rows we already computed).
    gate_in = jnp.concatenate([p[0:1, :] for p in partials], axis=-1)        # [1, 4*D]
    g1 = jnp.maximum(jnp.dot(gate_in, gw1_ref[...],
                             preferred_element_type=jnp.float32), 0.0)       # [1, D]
    logits = jnp.dot(g1, gw2_ref[...], preferred_element_type=jnp.float32)   # [1, 4]
    logits = logits - jnp.max(logits, axis=-1, keepdims=True)
    eg = jnp.exp(logits)
    g = eg / jnp.sum(eg, axis=-1, keepdims=True)                             # softmax f32

    # Post-softmax blend of the 4 partials (f32 VPU, matches the reference ordering).
    out = (g[:, 0:1] * partials[0] + g[:, 1:2] * partials[1]
           + g[:, 2:3] * partials[2] + g[:, 3:4] * partials[3])              # [S, D]
    # D < 128 makes this a lane-masked store at toy dims; real T5 D is a multiple of
    # 128, so no wrapper-side lane packing is done here.
    o_ref[0] = out.astype(o_ref.dtype)


def _build_fused_params(params):
    """Fold the MoE weights into per-routed-expert fused operands (bf16).

    For each routed expert e:
      Wi_fused[e] = [ ewi[e] | swi[0] | swi[1] | swi[2] ]      [D, 4*d_ff]
      Wo_fused[e] = [ ewo[e] ; swo[0] ; swo[1] ; swo[2] ]      [4*d_ff, D]
    Gate weights are passed through unfolded (f32) — the gate is computed in-kernel
    from the experts' first-token outputs.
    """
    swi, swo, ewi, ewo, gw1, gw2 = params
    n_shared, d_model, d_ff = swi.shape
    n_exp = ewi.shape[0]

    swi_cat = jnp.transpose(swi, (1, 0, 2)).reshape(d_model, n_shared * d_ff)  # [D, 3*d_ff]
    swo_cat = swo.reshape(n_shared * d_ff, d_model)                            # [3*d_ff, D]

    wi_fused = jnp.concatenate(
        [ewi, jnp.broadcast_to(swi_cat[None], (n_exp, d_model, n_shared * d_ff))],
        axis=-1)                                                   # [E, D, 4*d_ff]
    wo_fused = jnp.concatenate(
        [ewo, jnp.broadcast_to(swo_cat[None], (n_exp, n_shared * d_ff, d_model))],
        axis=1)                                                    # [E, 4*d_ff, D]

    return (wi_fused.astype(jnp.bfloat16), wo_fused.astype(jnp.bfloat16),
            gw1.astype(jnp.float32), gw2.astype(jnp.float32))


def mta_sharemoe3(hidden_states, expert_idx, params):
    """hidden_states: [B, S, D] f32, expert_idx: [B] int (routed expert per element)."""
    B, S, D = hidden_states.shape
    wi_fused, wo_fused, gw1, gw2 = _build_fused_params(params)
    n_exp, _, ffn4 = wi_fused.shape
    d_ff = ffn4 // NUM_GATES

    # Clamp routing indices so a bad id cannot turn into an out-of-bounds weight DMA.
    expert_idx = jnp.clip(expert_idx.astype(jnp.int32), 0, n_exp - 1)

    # Sort batch elements by routed expert: consecutive grid steps that share the same
    # weight block index skip the wi/wo re-DMA. The permutation is applied purely via
    # the scalar-prefetch index maps (hidden and output blocks), so there is no extra
    # HBM gather/scatter pass in the wrapper.
    order = jnp.argsort(expert_idx).astype(jnp.int32)      # [B] permutation
    sorted_exp = expert_idx[order]                         # [B] expert id per grid step

    kernel = functools.partial(_moe_kernel, d_ff=d_ff)
    return pl.pallas_call(
        kernel,
        out_shape=jax.ShapeDtypeStruct((B, S, D), hidden_states.dtype),
        grid_spec=pltpu.PrefetchScalarGridSpec(
            num_scalar_prefetch=2,                  # order + sorted expert ids in SMEM
            grid=(B,),
            in_specs=[
                pl.BlockSpec((1, S, D), lambda i, order, sexp: (order[i], 0, 0)),    # hidden
                pl.BlockSpec((1, D, ffn4), lambda i, order, sexp: (sexp[i], 0, 0)),  # fused wi
                pl.BlockSpec((1, ffn4, D), lambda i, order, sexp: (sexp[i], 0, 0)),  # fused wo
                pl.BlockSpec((4 * D, D), lambda i, order, sexp: (0, 0)),             # gate W1
                pl.BlockSpec((D, NUM_GATES), lambda i, order, sexp: (0, 0)),         # gate W2
            ],
            out_specs=pl.BlockSpec((1, S, D), lambda i, order, sexp: (order[i], 0, 0)),
        ),
        # Batch elements are independent -> shard the grid across TensorCores on v7x
        # (neutral on single-TC v5e / v6e).
        compiler_params=pltpu.CompilerParams(dimension_semantics=("parallel",)),
    )(order, sorted_exp, hidden_states, wi_fused, wo_fused, gw1, gw2)


# ---------------- pure-JAX f32 reference (mirrors the PyTorch forward) ----------------
def _ref_dense(x, wi, wo):
    # T5DenseActDense: wo(relu(wi(x))), dropout = identity (inference)
    return jnp.maximum(x @ wi, 0.0) @ wo


def reference(hidden_states, expert_idx, params):
    swi, swo, ewi, ewo, gw1, gw2 = params
    outs = []
    for i in range(hidden_states.shape[0]):
        h = hidden_states[i]
        s = [_ref_dense(h, swi[k], swo[k]) for k in range(NUM_SHARED)]
        k = int(expert_idx[i])
        e = _ref_dense(h, ewi[k], ewo[k])
        gate_in = jnp.concatenate([e[0], s[0][0], s[1][0], s[2][0]], axis=0)  # [4D]
        g = jax.nn.softmax(jnp.maximum(gate_in @ gw1, 0.0) @ gw2, axis=-1)    # [4]
        outs.append(e * g[0] + s[0] * g[1] + s[1] * g[2] + s[2] * g[3])
    return jnp.stack(outs)


if __name__ == "__main__":
    # Small shapes consistent with the module (d_model = 32, d_ff = 64, seq = 8).
    B, S, D, D_FF = 2, 8, 32, 64
    NUM_EXPERTS = len(TYPE_LIST)          # 5 routed experts

    key = jax.random.PRNGKey(0)
    ks = jax.random.split(key, 8)
    scale = 0.05
    hidden_states = jax.random.normal(ks[0], (B, S, D), jnp.float32)

    # Deterministic synthetic parameters (shapes from __init__), stored [in, out].
    swi = scale * jax.random.normal(ks[1], (NUM_SHARED, D, D_FF), jnp.float32)    # shared wi
    swo = scale * jax.random.normal(ks[2], (NUM_SHARED, D_FF, D), jnp.float32)    # shared wo
    ewi = scale * jax.random.normal(ks[3], (NUM_EXPERTS, D, D_FF), jnp.float32)   # routed wi
    ewo = scale * jax.random.normal(ks[4], (NUM_EXPERTS, D_FF, D), jnp.float32)   # routed wo
    gw1 = scale * jax.random.normal(ks[5], (4 * D, D), jnp.float32)               # gate Linear(4H->H)
    gw2 = scale * jax.random.normal(ks[6], (D, 4), jnp.float32)                   # gate Linear(H->4)
    params = (swi, swo, ewi, ewo, gw1, gw2)

    # type_label per batch element -> routed expert index (host-side string lookup,
    # like the PyTorch code).
    type_label = ["nli", "mrc"]
    expert_idx = jnp.asarray([TYPE_LIST.index(t) for t in type_label], jnp.int32)

    out = jax.block_until_ready(mta_sharemoe3(hidden_states, expert_idx, params))
    ref = jax.block_until_ready(reference(hidden_states, np.asarray(expert_idx), params))
    # Kernel uses bf16 matmul operands with f32 accumulation vs the pure-f32 reference.
    np.testing.assert_allclose(np.asarray(out), np.asarray(ref), rtol=2e-2, atol=2e-2)
    print("KERNEL_OK")
</pallas_src>

<mosaic_0001>
module attributes {stable_mosaic.version = 11 : i64} {
  func.func @_moe_kernel(%arg0: i32, %arg1: memref<2xi32, #tpu.memory_space<smem>>, %arg2: memref<2xi32, #tpu.memory_space<smem>>, %arg3: memref<1x8x32xf32, #tpu.memory_space<vmem>>, %arg4: memref<1x32x256xbf16, #tpu.memory_space<vmem>>, %arg5: memref<1x256x32xbf16, #tpu.memory_space<vmem>>, %arg6: memref<128x32xf32, #tpu.memory_space<vmem>>, %arg7: memref<32x4xf32, #tpu.memory_space<vmem>>, %arg8: memref<1x8x32xf32, #tpu.memory_space<vmem>>) attributes {dimension_semantics = [#tpu.dimension_semantics<parallel>], iteration_bounds = array<i64: 2>, scalar_prefetch = 2 : i64, scratch_operands = 0 : i64, tpu.core_type = #tpu.core_type<tc>, window_params = [{transform_indices = @transform_0, window_bounds = array<i64: 1, 8, 32>}, {transform_indices = @transform_1, window_bounds = array<i64: 1, 32, 256>}, {transform_indices = @transform_2, window_bounds = array<i64: 1, 256, 32>}, {pipeline_mode = #tpu.pipeline_mode<synchronous>, transform_indices = @transform_3, window_bounds = array<i64: 128, 32>}, {pipeline_mode = #tpu.pipeline_mode<synchronous>, transform_indices = @transform_4, window_bounds = array<i64: 32, 4>}, {transform_indices = @transform_5, window_bounds = array<i64: 1, 8, 32>}]} {
    %c0 = arith.constant 0 : index
    %c0_0 = arith.constant 0 : index
    %c0_1 = arith.constant 0 : index
    %0 = vector.load %arg3[%c0, %c0_0, %c0_1] : memref<1x8x32xf32, #tpu.memory_space<vmem>>, vector<1x8x32xf32>
    %1 = vector.shape_cast %0 : vector<1x8x32xf32> to vector<8x32xf32>
    %2 = arith.truncf %1 : vector<8x32xf32> to vector<8x32xbf16>
    %c0_2 = arith.constant 0 : index
    %c0_3 = arith.constant 0 : index
    %c0_4 = arith.constant 0 : index
    %3 = vector.load %arg4[%c0_2, %c0_3, %c0_4] : memref<1x32x256xbf16, #tpu.memory_space<vmem>>, vector<1x32x256xbf16>
    %4 = vector.shape_cast %3 : vector<1x32x256xbf16> to vector<32x256xbf16>
    %c0_5 = arith.constant 0 : index
    %c0_6 = arith.constant 0 : index
    %c0_7 = arith.constant 0 : index
    %5 = vector.load %arg5[%c0_5, %c0_6, %c0_7] : memref<1x256x32xbf16, #tpu.memory_space<vmem>>, vector<1x256x32xbf16>
    %6 = vector.shape_cast %5 : vector<1x256x32xbf16> to vector<256x32xbf16>
    %cst = arith.constant dense<0.000000e+00> : vector<8x256xf32>
    %7 = tpu.matmul %2, %4, %cst {dimension_numbers = #tpu.dot_dimension_numbers<[1], [0], [0], [1], [0, 0, 1, 1], [], []>} : vector<8x32xbf16>, vector<32x256xbf16>, vector<8x256xf32> -> vector<8x256xf32>
    %cst_8 = arith.constant 0.000000e+00 : f32
    %8 = vector.broadcast %cst_8 : f32 to vector<8x256xf32>
    %9 = arith.maximumf %7, %8 : vector<8x256xf32>
    %10 = arith.truncf %9 : vector<8x256xf32> to vector<8x256xbf16>
    %11 = vector.extract_strided_slice %10 {offsets = [0, 0], sizes = [8, 64], strides = [1, 1]} : vector<8x256xbf16> to vector<8x64xbf16>
    %12 = vector.extract_strided_slice %6 {offsets = [0, 0], sizes = [64, 32], strides = [1, 1]} : vector<256x32xbf16> to vector<64x32xbf16>
    %cst_9 = arith.constant dense<0.000000e+00> : vector<8x32xf32>
    %13 = tpu.matmul %11, %12, %cst_9 {dimension_numbers = #tpu.dot_dimension_numbers<[1], [0], [0], [1], [0, 0, 1, 1], [], []>} : vector<8x64xbf16>, vector<64x32xbf16>, vector<8x32xf32> -> vector<8x32xf32>
    %14 = vector.extract_strided_slice %10 {offsets = [0, 64], sizes = [8, 64], strides = [1, 1]} : vector<8x256xbf16> to vector<8x64xbf16>
    %15 = vector.extract_strided_slice %6 {offsets = [64, 0], sizes = [64, 32], strides = [1, 1]} : vector<256x32xbf16> to vector<64x32xbf16>
    %cst_10 = arith.constant dense<0.000000e+00> : vector<8x32xf32>
    %16 = tpu.matmul %14, %15, %cst_10 {dimension_numbers = #tpu.dot_dimension_numbers<[1], [0], [0], [1], [0, 0, 1, 1], [], []>} : vector<8x64xbf16>, vector<64x32xbf16>, vector<8x32xf32> -> vector<8x32xf32>
    %17 = vector.extract_strided_slice %10 {offsets = [0, 128], sizes = [8, 64], strides = [1, 1]} : vector<8x256xbf16> to vector<8x64xbf16>
    %18 = vector.extract_strided_slice %6 {offsets = [128, 0], sizes = [64, 32], strides = [1, 1]} : vector<256x32xbf16> to vector<64x32xbf16>
    %cst_11 = arith.constant dense<0.000000e+00> : vector<8x32xf32>
    %19 = tpu.matmul %17, %18, %cst_11 {dimension_numbers = #tpu.dot_dimension_numbers<[1], [0], [0], [1], [0, 0, 1, 1], [], []>} : vector<8x64xbf16>, vector<64x32xbf16>, vector<8x32xf32> -> vector<8x32xf32>
    %20 = vector.extract_strided_slice %10 {offsets = [0, 192], sizes = [8, 64], strides = [1, 1]} : vector<8x256xbf16> to vector<8x64xbf16>
    %21 = vector.extract_strided_slice %6 {offsets = [192, 0], sizes = [64, 32], strides = [1, 1]} : vector<256x32xbf16> to vector<64x32xbf16>
    %cst_12 = arith.constant dense<0.000000e+00> : vector<8x32xf32>
    %22 = tpu.matmul %20, %21, %cst_12 {dimension_numbers = #tpu.dot_dimension_numbers<[1], [0], [0], [1], [0, 0, 1, 1], [], []>} : vector<8x64xbf16>, vector<64x32xbf16>, vector<8x32xf32> -> vector<8x32xf32>
    %23 = vector.extract_strided_slice %13 {offsets = [0, 0], sizes = [1, 32], strides = [1, 1]} : vector<8x32xf32> to vector<1x32xf32>
    %24 = vector.extract_strided_slice %16 {offsets = [0, 0], sizes = [1, 32], strides = [1, 1]} : vector<8x32xf32> to vector<1x32xf32>
    %25 = vector.extract_strided_slice %19 {offsets = [0, 0], sizes = [1, 32], strides = [1, 1]} : vector<8x32xf32> to vector<1x32xf32>
    %26 = vector.extract_strided_slice %22 {offsets = [0, 0], sizes = [1, 32], strides = [1, 1]} : vector<8x32xf32> to vector<1x32xf32>
    %27 = tpu.concatenate %23, %24, %25, %26 in 1 : vector<1x32xf32>, vector<1x32xf32>, vector<1x32xf32>, vector<1x32xf32> -> vector<1x128xf32>
    %c0_13 = arith.constant 0 : index
    %c0_14 = arith.constant 0 : index
    %28 = vector.load %arg6[%c0_13, %c0_14] : memref<128x32xf32, #tpu.memory_space<vmem>>, vector<128x32xf32>
    %cst_15 = arith.constant dense<0.000000e+00> : vector<1x32xf32>
    %29 = tpu.matmul %27, %28, %cst_15 {dimension_numbers = #tpu.dot_dimension_numbers<[1], [0], [0], [1], [0, 0, 1, 1], [], []>} : vector<1x128xf32>, vector<128x32xf32>, vector<1x32xf32> -> vector<1x32xf32>
    %cst_16 = arith.constant 0.000000e+00 : f32
    %30 = vector.broadcast %cst_16 : f32 to vector<1x32xf32>
    %31 = arith.maximumf %29, %30 : vector<1x32xf32>
    %c0_17 = arith.constant 0 : index
    %c0_18 = arith.constant 0 : index
    %32 = vector.load %arg7[%c0_17, %c0_18] : memref<32x4xf32, #tpu.memory_space<vmem>>, vector<32x4xf32>
    %cst_19 = arith.constant dense<0.000000e+00> : vector<1x4xf32>
    %33 = tpu.matmul %31, %32, %cst_19 {dimension_numbers = #tpu.dot_dimension_numbers<[1], [0], [0], [1], [0, 0, 1, 1], [], []>} : vector<1x32xf32>, vector<32x4xf32>, vector<1x4xf32> -> vector<1x4xf32>
    %cst_20 = arith.constant dense<0xFF800000> : vector<1xf32>
    %34 = vector.multi_reduction <maximumf>, %33, %cst_20 [1] : vector<1x4xf32> to vector<1xf32>
    %35 = vector.shape_cast %34 : vector<1xf32> to vector<1x1xf32>
    %36 = vector.broadcast %35 : vector<1x1xf32> to vector<1x4xf32>
    %37 = arith.subf %33, %36 : vector<1x4xf32>
    %38 = math.exp %37 : vector<1x4xf32>
    %cst_21 = arith.constant dense<0.000000e+00> : vector<1xf32>
    %39 = vector.multi_reduction <add>, %38, %cst_21 [1] : vector<1x4xf32> to vector<1xf32>
    %40 = vector.shape_cast %39 : vector<1xf32> to vector<1x1xf32>
    %41 = vector.broadcast %40 : vector<1x1xf32> to vector<1x4xf32>
    %42 = arith.divf %38, %41 : vector<1x4xf32>
    %43 = vector.extract_strided_slice %42 {offsets = [0, 0], sizes = [1, 1], strides = [1, 1]} : vector<1x4xf32> to vector<1x1xf32>
    %44 = vector.broadcast %43 : vector<1x1xf32> to vector<8x32xf32>
    %45 = arith.mulf %44, %13 : vector<8x32xf32>
    %46 = vector.extract_strided_slice %42 {offsets = [0, 1], sizes = [1, 1], strides = [1, 1]} : vector<1x4xf32> to vector<1x1xf32>
    %47 = vector.broadcast %46 : vector<1x1xf32> to vector<8x32xf32>
    %48 = arith.mulf %47, %16 : vector<8x32xf32>
    %49 = arith.addf %45, %48 : vector<8x32xf32>
    %50 = vector.extract_strided_slice %42 {offsets = [0, 2], sizes = [1, 1], strides = [1, 1]} : vector<1x4xf32> to vector<1x1xf32>
    %51 = vector.broadcast %50 : vector<1x1xf32> to vector<8x32xf32>
    %52 = arith.mulf %51, %19 : vector<8x32xf32>
    %53 = arith.addf %49, %52 : vector<8x32xf32>
    %54 = vector.extract_strided_slice %42 {offsets = [0, 3], sizes = [1, 1], strides = [1, 1]} : vector<1x4xf32> to vector<1x1xf32>
    %55 = vector.broadcast %54 : vector<1x1xf32> to vector<8x32xf32>
    %56 = arith.mulf %55, %22 : vector<8x32xf32>
    %57 = arith.addf %53, %56 : vector<8x32xf32>
    %c0_22 = arith.constant 0 : index
    %c0_23 = arith.constant 0 : index
    %c0_24 = arith.constant 0 : index
    %58 = vector.load %arg8[%c0_22, %c0_23, %c0_24] : memref<1x8x32xf32, #tpu.memory_space<vmem>>, vector<1x8x32xf32>
    %59 = vector.shape_cast %58 : vector<1x8x32xf32> to vector<8x32xf32>
    %60 = vector.shape_cast %57 : vector<8x32xf32> to vector<1x8x32xf32>
    tpu.vector_store %arg8[%c0_22, %c0_23, %c0_24], %60 {strides = array<i32>} : memref<1x8x32xf32, #tpu.memory_space<vmem>>, vector<1x8x32xf32>,
    return
  }
  func.func @transform_0(%arg0: i32, %arg1: memref<2xi32, #tpu.memory_space<smem>>, %arg2: memref<2xi32, #tpu.memory_space<smem>>) -> (i32, i32, i32) {
    %0 = arith.index_cast %arg0 : i32 to index
    %1 = memref.load %arg1[%0] : memref<2xi32, #tpu.memory_space<smem>>
    %c0_i32 = arith.constant 0 : i32
    %c0_i32_0 = arith.constant 0 : i32
    %c0_i32_1 = arith.constant 0 : i32
    return %1, %c0_i32, %c0_i32_0 : i32, i32, i32
  }
  func.func @transform_1(%arg0: i32, %arg1: memref<2xi32, #tpu.memory_space<smem>>, %arg2: memref<2xi32, #tpu.memory_space<smem>>) -> (i32, i32, i32) {
    %0 = arith.index_cast %arg0 : i32 to index
    %1 = memref.load %arg2[%0] : memref<2xi32, #tpu.memory_space<smem>>
    %c0_i32 = arith.constant 0 : i32
    %c0_i32_0 = arith.constant 0 : i32
    %c0_i32_1 = arith.constant 0 : i32
    return %1, %c0_i32, %c0_i32_0 : i32, i32, i32
  }
  func.func @transform_2(%arg0: i32, %arg1: memref<2xi32, #tpu.memory_space<smem>>, %arg2: memref<2xi32, #tpu.memory_space<smem>>) -> (i32, i32, i32) {
    %0 = arith.index_cast %arg0 : i32 to index
    %1 = memref.load %arg2[%0] : memref<2xi32, #tpu.memory_space<smem>>
    %c0_i32 = arith.constant 0 : i32
    %c0_i32_0 = arith.constant 0 : i32
    %c0_i32_1 = arith.constant 0 : i32
    return %1, %c0_i32, %c0_i32_0 : i32, i32, i32
  }
  func.func @transform_3(%arg0: i32, %arg1: memref<2xi32, #tpu.memory_space<smem>>, %arg2: memref<2xi32, #tpu.memory_space<smem>>) -> (i32, i32) {
    %c0_i32 = arith.constant 0 : i32
    %c0_i32_0 = arith.constant 0 : i32
    %c0_i32_1 = arith.constant 0 : i32
    return %c0_i32, %c0_i32_0 : i32, i32
  }
  func.func @transform_4(%arg0: i32, %arg1: memref<2xi32, #tpu.memory_space<smem>>, %arg2: memref<2xi32, #tpu.memory_space<smem>>) -> (i32, i32) {
    %c0_i32 = arith.constant 0 : i32
    %c0_i32_0 = arith.constant 0 : i32
    %c0_i32_1 = arith.constant 0 : i32
    return %c0_i32, %c0_i32_0 : i32, i32
  }
  func.func @transform_5(%arg0: i32, %arg1: memref<2xi32, #tpu.memory_space<smem>>, %arg2: memref<2xi32, #tpu.memory_space<smem>>) -> (i32, i32, i32) {
    %0 = arith.index_cast %arg0 : i32 to index
    %1 = memref.load %arg1[%0] : memref<2xi32, #tpu.memory_space<smem>>
    %c0_i32 = arith.constant 0 : i32
    %c0_i32_0 = arith.constant 0 : i32
    %c0_i32_1 = arith.constant 0 : i32
    return %1, %c0_i32, %c0_i32_0 : i32, i32, i32
  }
}

</mosaic_0001>

<bundles_post_ra>
// kernel: tpu_custom_call.1
= control target key start
LH: loop header
LB: loop body
LE: loop exit
PB: predicated region body
PF: predicated region fallthrough
CT: control target
= control target key end

     0   :  { %s1685_s0 = inlined_call_operand.vmem [shape: s32[2], index: 0, kind: input, shape index: {}]   ;;  %s1686_s2 = inlined_call_operand.vmem [shape: f32[2,8,32], index: 2, kind: input, shape index: {}]   ;;  %s1687_s3 = inlined_call_operand.vmem [shape: bf16[5,32,256], index: 3, kind: input, shape index: {}]   ;;  %s1688_s4 = inlined_call_operand.vmem [shape: bf16[5,256,32], index: 4, kind: input, shape index: {}]   ;;  %s1689_s5 = inlined_call_operand.vmem [shape: f32[128,32], index: 5, kind: input, shape index: {}]   ;;  %s1690_s6 = inlined_call_operand.vmem [shape: f32[32,4], index: 6, kind: input, shape index: {}]   ;;  %s1691_s7 = inlined_call_operand.hbm [shape: f32[2,8,32], index: 7, kind: output, shape index: {}]   ;;  %s1692_s1 = inlined_call_operand.vmem [shape: s32[2], index: 1, kind: input, shape index: {}]  }
   0x1   :  { %s12_s26 = sshll.u32 %s1685_s0, 4  ;;  %s16_s29 = sshll.u32 %s1692_s1, 4  ;;  %s13_s26 = int_to_ptr.vmem [resolvable:$true] %s12_s26  ;;  %s17_s29 = int_to_ptr.vmem [resolvable:$true] %s16_s29 }
   0x2   :  { %s1291_s30 = scalar_lea.vmem %s13_s26, 16  ;;  %p1296_p1 = scmp.lt.s32.totalorder %s13_s26, %s13_s26 }
   0x3   :  { %p1292_p0 = scmp.ne.s32.totalorder %s13_s26, %s1291_s30  ;;  %p1297_p2 = scmp.lt.s32.totalorder %s1291_s30, %s1291_s30 }
   0x5   :  { %p1298_p3 = por %p1297_p2, %p1296_p1 }
   0x7   :  { %p1299_p4 = pnand %p1298_p3, %p1292_p0 }
   0x9   :  { %1302 = shalt.err (!%p1299_p4)  }
   0xa   :  { %s1381_s8 = smov [#allocation3]   ;;  %s1303_s9 = scalar_lea.vmem %s17_s29, 16 }
   0xb   :  { %15 = dma.vmem_to_smem %s13_s26, 16, %s1381_s8, [#allocation2] }
   0xc   :  { %p1304_p5 = scmp.ne.s32.totalorder %s17_s29, %s1303_s9  ;;  %p1308_p6 = scmp.lt.s32.totalorder %s17_s29, %s17_s29 }
   0xd   :  { %p1309_p7 = scmp.lt.s32.totalorder %s1303_s9, %s1303_s9 }
   0xf   :  { %p1310_p8 = por %p1309_p7, %p1308_p6 }
  0x11   :  { %p1311_p9 = pnand %p1310_p8, %p1304_p5 }
  0x13   :  { %1314 = shalt.err (!%p1311_p9)  }
  0x14   :  { %s1382_s0 = smov [#allocation4]  }
  0x15   :  { %19 = dma.vmem_to_smem %s17_s29, 16, %s1382_s0, [#allocation2] }
  0x16   :  { %1359 = dma.done.wait [#allocation2], 32 }
  0x17   :  { %1360 = vsyncadd [#allocation2], 4294967264 }
  0x18   :  { %21 = sfence }
  0x19   :  { %22 = vsyncpa [#allocation6], 0 }
  0x1a   :  { %24 = vsyncpa [#allocation6 + $0x1], 0  ;;  %s1440_s1 = smov 0   ;;  %s1442_s10 = smov 0  }
  0x1b   :  { %s1444_s11 = smov 0   ;;  %s1446_s12 = smov 0  }
  0x1c LB: > { %s1461_s13 = sadd.s32 4294967295, %s1379_s12   ;;  %s996_s14 = sadd.s32 4294967294, %s1379_s12   ;;  %s1379_s12 = sphi %s1446_s12, %s1698_s12   ;;  %s1375_s11 = sphi %s1444_s11, %s1697_s11   ;;  %s1371_s10 = sphi %s1442_s10, %s1696_s10   ;;  %s1367_s1 = sphi %s1440_s1, %s1695_s1  }
  0x1d   : > { %s1465_s15 = sadd.s32 1, %s1379_s12   ;;  %s160_s16 = sld [smem:[#allocation3 + %s1379_s12]] }
  0x1e   : > { %s161_s17 = sld [smem:[#allocation3 + %s1465_s15]]  ;;  %p175_p10 = scmp.ne.s32.totalorder %s1375_s11, %s1371_s10 }
  0x1f   : > { %p176_p11 = scmp.eq.s32.totalorder %s1461_s13, 1  ;;  %p181_p12 = scmp.ne.s32.totalorder %s1371_s10, %s1367_s1 }
  0x20   : > { %p182_p13 = scmp.eq.s32.totalorder %s996_s14, 1  ;;  %p999_p1 = scmp.ge.s32.totalorder %s1379_s12, 1 }
  0x21   : > { %p1474_p0 = por %p176_p11, %p175_p10  ;;  %p235_p3 = scmp.lt.s32.totalorder %s1379_s12, 3 }
  0x22   : > { %p1479_p2 = por %p182_p13, %p181_p12  ;;  %s165_s20 = sadd.s32 1, %s1375_s11 }
  0x23   : > { %p236_p4 = pnand %p999_p1, %p235_p3 }
  0x24   : > { %s162_s21 = ssub.s32 %s160_s16, %s161_s17  ;;  %s281_s23 = sld [smem:[#allocation4 + %s1461_s13]] (!%p236_p4)  ;;  %v1383_v0 = vmov (!%p236_p4), 0   ;;  %v1384_v1 = vmov (!%p236_p4), 0.0   ;;  %vm355_vm0 = vcmask (!%p236_p4), 261120   ;;  %vm1385_vm1 = vmmov (!%p236_p4), 0   ;;  %v695_v38 = vld [vmem:[%s1689_s5] sm:$0xff] (!%p236_p4) }
  0x25   : > { %p163_p5 = scmp.eq.s32.totalorder %s162_s21, 0  ;;  %239 = sbr.rel (%p236_p4) target bundleno = 1660 (0x67c), region = 40  ;;  %391 = vmatprep.mubr.bf16.mxu0 (!%p236_p4), %v1383_v0  ;;  %1080 = vmatprep.subr.bf16.mxu1 (!%p236_p4), %v1384_v1  ;;  %vm428_vm2 = vcmask (!%p236_p4), 523264   ;;  %v696_v39 = vld [vmem:[%s1689_s5 + $0x8] sm:$0xff] (!%p236_p4)  ;;  %v697_v40 = vld [vmem:[%s1689_s5 + $0x10] sm:$0xff] (!%p236_p4)  ;;  %v1387_v41 = vmov (!%p236_p4), 0.0|0.0  }
  0x26   : > { %s275_s24 = sld [smem:[#allocation3 + %s1461_s13]] (!%p236_p4)  ;;  %1088 = vmatprep.mubr.msk.bf16.mxu1 (!%p236_p4), %vm1385_vm1, %v1384_v1  ;;  %s1386_s21 = smov (!%p236_p4), 64   ;;  %v1175_v42 = vpack.c.bf16 (!%p236_p4), %v696_v39, %v695_v38  ;;  %v698_v43 = vld [vmem:[%s1689_s5 + $0x18] sm:$0xff] (!%p236_p4)  ;;  %v699_v45 = vld [vmem:[%s1689_s5 + $0x20] sm:$0xff] (!%p236_p4)  ;;  %v700_v46 = vld [vmem:[%s1689_s5 + $0x28] sm:$0xff] (!%p236_p4)  ;;  %vm693_vm3 = vcmask (!%p236_p4), 785408  }
  0x27   : > { %s1486_s22 = scalar_select %p163_p5, %s1375_s11, %s165_s20  }
  0x28   : > { %s288_s25 = sld [smem:[#allocation4 + %s1461_s13]] (!%p236_p4)  ;;  %v1178_v44 = vpack.c.bf16 (!%p236_p4), %v698_v43, %v697_v40  ;;  %v1181_v47 = vpack.c.bf16 (!%p236_p4), %v700_v46, %v699_v45  ;;  %v701_v48 = vld [vmem:[%s1689_s5 + $0x30] sm:$0xff] (!%p236_p4)  ;;  %v702_v49 = vld [vmem:[%s1689_s5 + $0x38] sm:$0xff] (!%p236_p4)  ;;  %v703_v55 = vld [vmem:[%s1689_s5 + $0x40] sm:$0xff] (!%p236_p4)  ;;  %vm859_vm4 = vcmask (!%p236_p4), 24576   ;;  %s1391_s16 = smov (!%p236_p4), 127  }
  0x29   : > { %v1184_v52 = vpack.c.bf16 (!%p236_p4), %v702_v49, %v701_v48  ;;  %v704_v56 = vld [vmem:[%s1689_s5 + $0x48] sm:$0xff] (!%p236_p4)  ;;  %v705_v58 = vld [vmem:[%s1689_s5 + $0x50] sm:$0xff] (!%p236_p4)  ;;  %v706_v59 = vld [vmem:[%s1689_s5 + $0x58] sm:$0xff] (!%p236_p4)  ;;  %s1392_s17 = smov (!%p236_p4), 125  }
  0x2a   : > { %p282_p6 = scmp.lt.s32.totalorder (!%p236_p4), %s281_s23, 4  ;;  %v1187_v57 = vpack.c.bf16 (!%p236_p4), %v704_v56, %v703_v55  ;;  %v1190_v60 = vpack.c.bf16 (!%p236_p4), %v706_v59, %v705_v58  ;;  %v707_v61 = vld [vmem:[%s1689_s5 + $0x60] sm:$0xff] (!%p236_p4)  ;;  %v708_v62 = vld [vmem:[%s1689_s5 + $0x68] sm:$0xff] (!%p236_p4)  ;;  %v709_v0 = vld [vmem:[%s1689_s5 + $0x70] sm:$0xff] (!%p236_p4) }
  0x2b   : > { %v1193_v63 = vpack.c.bf16 (!%p236_p4), %v708_v62, %v707_v61 }
  0x2c   : > { %p276_p7 = scmp.lt.s32.totalorder %s275_s24, 1  ;;  %s1700_s23 = smov (!%p282_p6, %s281_s23), 4 }
  0x2d   : > { %s1036_s26 = sshll.u32 %s1700_s23, 5  ;;  %s1706_s13 = smov (!%p1474_p0, %s1461_s13), 0 }
  0x2e   : > { %p289_p8 = scmp.lt.s32.totalorder %s288_s25, 4  ;;  %s1702_s24 = smov (!%p276_p7, %s275_s24), 1 }
  0x2f   : > { %s286_s29 = scalar_lea.vmem %s1687_s3, %s1036_s26  ;;  %s1001_s30 = sshll.u32 %s1702_s24, 3 }
  0x30   : > { %v1265_v2 = vld [vmem:[%s286_s29 + $0x4] ss:$8 sps:$4 sm:$0xff]   ;;  %s279_s0 = scalar_lea.vmem %s1686_s2, %s1001_s30  ;;  %v1267_v3 = vld [vmem:[%s286_s29] ss:$8 sps:$4 sm:$0xff]   ;;  %s1704_s25 = smov (!%p289_p8, %s288_s25), 4 }
  0x31   : > { %359 = vmatprep.subr.bf16.mxu0 %v1265_v2  ;;  %v1268_v4 = vld [vmem:[%s286_s29 + $0x14] ss:$8 sps:$4 sm:$0xff]   ;;  %v1270_v5 = vld [vmem:[%s286_s29 + $0x10] ss:$8 sps:$4 sm:$0xff]   ;;  %v297_v6 = vld [vmem:[%s279_s0] sm:$0xff]  ;;  %s1037_s14 = sshll.u32 %s1704_s25, 7 }
  0x32   : > { %360 = vmatpush1.bf16.msra.mxu0 %v1267_v3  ;;  %s1501_s20 = scalar_lea.vmem %s1688_s4, %s1037_s14  ;;  %v298_v8 = vpack.c.bf16 %v297_v6, %v297_v6  ;;  %s1388_s25 = smov 32  }
  0x33   : > { %361 = vmatprep.subr.bf16.mxu0 %v1268_v4  ;;  %v1271_v7 = vld [vmem:[%s1501_s20] sm:$0xff]   ;;  %v1272_v9 = vld [vmem:[%s1501_s20 + $0x8] sm:$0xff]   ;;  %v1273_v10 = vld [vmem:[%s1501_s20 + $0x10] sm:$0xff]   ;;  %s1390_s14 = smov 126   ;;  %s272_s24 = sand.u32 1, %s1371_s10  }
  0x34   : > { %1081 = vmatpush3.bf16.msra.mxu1 %v1271_v7  ;;  %v1274_v11 = vld [vmem:[%s1501_s20 + $0x18] sm:$0xff]   ;;  %v1279_v12 = vld [vmem:[%s1501_s20 + $0x20] sm:$0xff]   ;;  %v1280_v13 = vld [vmem:[%s1501_s20 + $0x28] sm:$0xff]   ;;  %s1000_s26 = sshll.u32 %s272_s24, 3 }
  0x35   : > { %1082 = vmatprep.subr.bf16.mxu1 %v1384_v1  ;;  %v1281_v14 = vld [vmem:[%s1501_s20 + $0x30] sm:$0xff]   ;;  %v1282_v15 = vld [vmem:[%s1501_s20 + $0x38] sm:$0xff]   ;;  %v1275_v20 = vld [vmem:[%s1501_s20 + $0x40] sm:$0xff]   ;;  %s274_s8 = scalar_lea.vmem [#allocation5], %s1000_s26 }
  0x36   : > { %362 = vmatpush1.bf16.msra.mxu0 %v1270_v5  ;;  %v1276_v24 = vld [vmem:[%s1501_s20 + $0x48] sm:$0xff]   ;;  %v1277_v26 = vld [vmem:[%s1501_s20 + $0x50] sm:$0xff]   ;;  %v1278_v27 = vld [vmem:[%s1501_s20 + $0x58] sm:$0xff]   ;;  %s913_s9 = sshll.u32 %s274_s8, 4  ;;  %s1644_s9 = int_to_ptr.vmem [resolvable:$true] %s913_s9 }
  0x37   : > { %1092 = vmatprep.subr.bf16.mxu0 %v1384_v1  ;;  %v1283_v28 = vld [vmem:[%s1501_s20 + $0x60] sm:$0xff]   ;;  %v1284_v30 = vld [vmem:[%s1501_s20 + $0x68] sm:$0xff]   ;;  %v1285_v31 = vld [vmem:[%s1501_s20 + $0x70] sm:$0xff]  }
  0x38   : > { %1083 = vmatpush3.bf16.msra.mxu1 %v1272_v9  ;;  %v1286_v32 = vld [vmem:[%s1501_s20 + $0x78] sm:$0xff]   ;;  %v782_v7 = vld [vmem:[%s1690_s6] sm:$0xff]  ;;  %v784_v9 = vld [vmem:[%s1690_s6 + $0x10] sm:$0xff]  ;;  %s1212_s20 = scalar_select %p1474_p0, [#allocation3], [#allocation7] }
  0x39   : > { %1010 = vmatmul.mubr.msk.bf16.vlgmr.msra.gmra.mrb[0].mxu0 %vm355_vm0, %v298_v8  ;;  %1084 = vmatprep.subr.bf16.mxu1 %v1384_v1  ;;  %v783_v8 = vld [vmem:[%s1690_s6 + $0x8] sm:$0xff] }
  0x3a   : > { %1100 = vmatprep.mubr.msk.bf16.mxu0 %vm1385_vm1, %v1384_v1  ;;  %1093 = vmatpush3.bf16.msra.mxu0 %v1279_v12 }
  0x3b   : > { %1094 = vmatprep.subr.bf16.mxu0 %v1384_v1 }
  0x3c   : > { %1085 = vmatpush3.bf16.msra.mxu1 %v1273_v10  ;;  %v1199_v10 = vpack.c.bf16 %v783_v8, %v782_v7 }
  0x3d   : > { %1086 = vmatprep.subr.bf16.mxu1 %v1384_v1 }
  0x3e   : > { %1095 = vmatpush3.bf16.msra.mxu0 %v1280_v13 }
  0x3f   : > { %1096 = vmatprep.subr.bf16.mxu0 %v1384_v1 }
  0x40   : > { %1087 = vmatpush3.bf16.msra.mxu1 %v1274_v11  ;;  %v785_v11 = vld [vmem:[%s1690_s6 + $0x18] sm:$0xff] }
  0x41   : > { %1104 = vmatprep.subr.bf16.mxu1 %v1384_v1  ;;  %v1202_v12 = vpack.c.bf16 %v785_v11, %v784_v9 }
  0x42   : > { %1097 = vmatpush3.bf16.msra.mxu0 %v1281_v14 }
  0x43   : > { %1098 = vmatprep.subr.bf16.mxu0 %v1384_v1 }
  0x46   : > { %1099 = vmatpush3.bf16.msra.mxu0 %v1282_v15 }
  0x47   : > { %1116 = vmatprep.subr.bf16.mxu0 %v1384_v1 }
 0x10c   : > { %v393_v16 = vpop.f32.mrb[0].mxu0 }
 0x10d   : > { %v400_v17 = vmax.f32 %v393_v16, 0.0  ;;  %v395_v18 = vpop.f32.mrb[1].mxu0 }
 0x10e   : > { %v397_v19 = vpop.f32.mrb[2].mxu0  ;;  %v401_v22 = vmax.f32 %v395_v18, 0.0 }
 0x10f   : > { %v402_v21 = vpack.c.bf16 %v400_v17, %v400_v17  ;;  %v398_v23 = vpop.f32.mrb[3].mxu0 }
 0x110   : > { %v403_v25 = vpack.c.bf16 %v401_v22, %v401_v22 }
 0x111   : > { %473 = vrot.lane.b32.xlu0 %v402_v21, %s1386_s21  ;;  %1089 = vmatmul.mubr.msk.bf16.vlgmr.msra.gmra.mrb[0].mxu1 %vm428_vm2, %v402_v21 }
 0x112   : > { %1105 = vmatpush3.bf16.msra.mxu1 %v1275_v20  ;;  %1112 = vmatprep.mubr.msk.bf16.mxu1 %vm1385_vm1, %v1384_v1 }
 0x113   : > { %1106 = vmatprep.subr.bf16.mxu1 %v1384_v1 }
 0x115   : > { %610 = vrot.lane.b32.xlu0 %v403_v25, %s1386_s21 }
 0x116   : > { %1107 = vmatpush3.bf16.msra.mxu1 %v1276_v24 }
 0x117   : > { %1108 = vmatprep.subr.bf16.mxu1 %v1384_v1 }
 0x11a   : > { %1109 = vmatpush3.bf16.msra.mxu1 %v1277_v26 }
 0x11b   : > { %1110 = vmatprep.subr.bf16.mxu1 %v1384_v1 }
 0x11e   : > { %1111 = vmatpush3.bf16.msra.mxu1 %v1278_v27 }
 0x11f   : > { %1174 = vmatprep.subr.bf16.mxu1 %v1387_v41 }
 0x121   : > { %1113 = vmatmul.mubr.msk.bf16.vlgmr.msra.gmra.mrb[4].mxu1 %vm428_vm2, %v403_v25 }
 0x122   : > { %1160 = vmatprep.mubr.msk.f32.mxu1 %vm1385_vm1, %v1384_v1  ;;  %1176 = vmatpush3.bf16.msra.mxu1 %v1175_v42 }
 0x123   : > { %1177 = vmatprep.subr.bf16.mxu1 %v1387_v41 }
 0x126   : > { %1179 = vmatpush3.bf16.msra.mxu1 %v1178_v44 }
 0x127   : > { %1180 = vmatprep.subr.bf16.mxu1 %v1387_v41 }
 0x12a   : > { %1182 = vmatpush3.bf16.msra.mxu1 %v1181_v47 }
 0x12b   : > { %1183 = vmatprep.subr.bf16.mxu1 %v1387_v41 }
 0x12e   : > { %1185 = vmatpush3.bf16.msra.mxu1 %v1184_v52 }
 0x12f   : > { %1186 = vmatprep.subr.bf16.mxu1 %v1387_v41 }
 0x132   : > { %1188 = vmatpush3.bf16.msra.mxu1 %v1187_v57 }
 0x133   : > { %1189 = vmatprep.subr.bf16.mxu1 %v1387_v41 }
 0x136   : > { %1191 = vmatpush3.bf16.msra.mxu1 %v1190_v60 }
 0x137   : > { %1192 = vmatprep.subr.bf16.mxu1 %v1387_v41 }
 0x13a   : > { %1194 = vmatpush3.bf16.msra.mxu1 %v1193_v63 }
 0x13b   : > { %1195 = vmatprep.subr.bf16.mxu1 %v1387_v41 }
 0x183   : > { %v474_v29 = vpop.permute.xlu0 %473 }
 0x184   : > { %1101 = vmatmul.mubr.msk.bf16.vlgmr.msra.gmra.mrb[4].mxu0 %vm428_vm2, %v474_v29 }
 0x185   : > { %1117 = vmatpush3.bf16.msra.mxu0 %v1283_v28  ;;  %1124 = vmatprep.mubr.msk.bf16.mxu0 %vm1385_vm1, %v1384_v1 }
 0x186   : > { %1118 = vmatprep.subr.bf16.mxu0 %v1384_v1 }
 0x187   : > { %v611_v33 = vpop.permute.xlu0 %610 }
 0x189   : > { %1119 = vmatpush3.bf16.msra.mxu0 %v1284_v30 }
 0x18a   : > { %1120 = vmatprep.subr.bf16.mxu0 %v1384_v1 }
 0x18d   : > { %1121 = vmatpush3.bf16.msra.mxu0 %v1285_v31 }
 0x18e   : > { %1122 = vmatprep.subr.bf16.mxu0 %v1384_v1 }
 0x191   : > { %1123 = vmatpush3.bf16.msra.mxu0 %v1286_v32 }
 0x192   : > { %1198 = vmatprep.subr.bf16.mxu0 %v1387_v41 }
 0x194   : > { %1125 = vmatmul.mubr.msk.bf16.vlgmr.msra.gmra.mrb[8].mxu0 %vm428_vm2, %v611_v33 }
 0x195   : > { %1171 = vmatprep.mubr.msk.f32.mxu0 %vm1385_vm1, %v1384_v1  ;;  %v710_v1 = vld [vmem:[%s1689_s5 + $0x78] sm:$0xff]  ;;  %1200 = vmatpush3.bf16.msra.mxu0 %v1199_v10 }
 0x196   : > { %v1196_v2 = vpack.c.bf16 %v710_v1, %v709_v0  ;;  %1201 = vmatprep.subr.bf16.mxu0 %v1387_v41 }
 0x198   : > { %1197 = vmatpush3.bf16.msra.mxu1 %v1196_v2 }
 0x199   : > { %1203 = vmatpush3.bf16.msra.mxu0 %v1202_v12 }
 0x1e4   : > { %v1553_v34 = vpop.f32.mrb[0].mxu1 }
 0x1e5   : > { %v1090_v35 = vpop.f32.mrb[1].mxu1 }
 0x1e6   : > { %v469_v36 = vpop.f32.mrb[2].mxu1 }
 0x1e7   : > { %v1091_v37 = vpop.f32.mrb[3].mxu1 }
 0x1f4   : > { %v1579_v50 = vpop.f32.mrb[4].mxu1 }
 0x1f5   : > { %v1114_v51 = vpop.f32.mrb[5].mxu1 }
 0x1f6   : > { %v606_v53 = vpop.f32.mrb[6].mxu1 }
 0x1f7   : > { %v1115_v54 = vpop.f32.mrb[7].mxu1 }
 0x257   : > { %v1605_v3 = vpop.f32.mrb[4].mxu0 }
 0x258   : > { %680 = vrot.lane.b32.xlu1 %v1605_v3, %s1388_s25  ;;  %v1102_v4 = vpop.f32.mrb[5].mxu0  ;;  %s906_s25 = sld [smem:[%s1212_s20 + %s1706_s13]] }
 0x259   : > { %v539_v5 = vpop.f32.mrb[6].mxu0 }
 0x25a   : > { %v1103_v6 = vpop.f32.mrb[7].mxu0 }
 0x25c   : > { %684 = vrot.lane.b32.xlu1 %v1579_v50, %s1386_s21  ;;  %s1389_s21 = smov 96  }
 0x25e   : > { %s1033_s30 = sshll.u32 %s906_s25, 7 }
 0x267   : > { %v1622_v13 = vpop.f32.mrb[8].mxu0 }
 0x268   : > { %688 = vrot.lane.b32.xlu0 %v1622_v13, %s1389_s21  ;;  %v1126_v14 = vpop.f32.mrb[9].mxu0  ;;  %s1642_s21 = scalar_lea.hbm %s1691_s7, %s1033_s30 }
 0x269   : > { %v676_v15 = vpop.f32.mrb[10].mxu0 }
 0x26a   : > { %v1127_v16 = vpop.f32.mrb[11].mxu0 }
 0x2ca   : > { %v681_v17 = vpop.permute.xlu1 %680 }
 0x2cb   : > { %v691_v19 = vsel %vm355_vm0, %v1553_v34, %v681_v17 }
 0x2ce   : > { %v685_v18 = vpop.permute.xlu1 %684 }
 0x2cf   : > { %v692_v20 = vsel %vm428_vm2, %v691_v19, %v685_v18 }
 0x2da   : > { %v689_v21 = vpop.permute.xlu0 %688 }
 0x2db   : > { %v694_v22 = vsel %vm693_vm3, %v692_v20, %v689_v21 }
 0x2dc   : > { %1161 = vmatmul.mubr.f32.vlgmr.msra.gmra.mrb[8].mxu1 %v694_v22 }
 0x3af   : > { %v777_v23 = vpop.f32.mrb[8].mxu1 }
 0x3b0   : > { %v781_v24 = vmax.f32 %v777_v23, 0.0  ;;  %v1162_v25 = vpop.f32.mrb[9].mxu1 }
 0x3b2   : > { %1172 = vmatmul.mubr.msk.f32.vlgmr.msra.gmra.mrb[12].mxu0 %vm355_vm0, %v781_v24 }
 0x485   : > { %v855_v26 = vpop.f32.mrb[12].mxu0 }
 0x486   : > { %v1173_v27 = vpop.f32.mrb[13].mxu0  ;;  %v860_v28 = vsel %vm859_vm4, %v855_v26, -inf }
 0x487   : > { %861 = vmax.xlane.f32.xlu1 %v860_v28 }
 0x514   : > { %v862_v29 = vpop.xlane.xlu1 %861 }
 0x515   : > { %v863_v30 = vsub.f32 %v855_v26, %v862_v29 }
 0x517   : > { %v864_v31 = vmul.f32 1.442695, %v863_v30 }
 0x519   : > { %1287 = vpow2.f32 %v864_v31 }
 0x523   : > { %v1288_v32 = vpop.eup %1287 }
 0x524   : > { %v866_v33 = vsel %vm859_vm4, %v1288_v32, 0.0 }
 0x525   : > { %867 = vadd.xlane.f32.xlu0 %v866_v33 }
 0x5b2   : > { %v868_v35 = vpop.xlane.xlu0 %867 }
 0x5b3   : > { %1289 = vrcp.f32 %v868_v35 }
 0x5bd   : > { %v1290_v36 = vpop.eup %1289 }
 0x5be   : > { %v870_v37 = vmul.f32 %v1290_v36, %v1288_v32 }
 0x5c0   : > { %883 = vrot.lane.b32.xlu1 %v870_v37, %s1390_s14  ;;  %876 = vrot.lane.b32.xlu0 %v870_v37, %s1391_s16  ;;  %1204 = vpush %v870_v37  ;;  %s899_s14 = scalar_lea.sflag [#allocation6], %s272_s24  ;;  %s1315_s16 = scalar_lea.vmem %s1644_s9, 128 }
 0x5c1   : > { %p1316_p9 = scmp.ne.s32.totalorder %s1644_s9, %s1315_s16 }
 0x5c3   : > { %p1317_p10 = pnand %p1316_p9, %p1474_p0 }
 0x5c4   : > { %890 = vrot.lane.b32.xlu1 %v870_v37, %s1392_s17  ;;  %s1393_s17 = smov [#allocation5]  }
 0x5c5   : > { %p1318_p11 = pneg %p1317_p10  ;;  %s1319_s20 = sshll.u32 %s1393_s17, 4  ;;  %s1320_s20 = int_to_ptr.vmem [resolvable:$false] %s1319_s20 }
 0x5c6   : > { %p1322_p12 = scmp.lt.s32.totalorder %s1644_s9, %s1320_s20 }
 0x5f1   : > { %s1205_s23 = spop %1204 }
 0x5f2   : > { %v873_v41 = vstv %s1205_s23  ;;  %s1321_s23 = scalar_lea.vmem %s1320_s20, 256 }
 0x5f3   : > { %v875_v43 = vmul.f32 %v873_v41, %v1553_v34  ;;  %p1323_p13 = scmp.lt.s32.totalorder %s1321_s23, %s1315_s16 }
 0x5f5   : > { %p1324_p1 = por %p1323_p13, %p1322_p12 }
 0x5f7   : > { %p1325_p3 = pnand %p1324_p1, %p1318_p11 }
 0x632   : > { %v884_v38 = vpop.permute.xlu1 %883  ;;  %v877_v39 = vpop.permute.xlu0 %876 }
 0x633   : > { %1206 = vpush %v877_v39 }
 0x634   : > { %1208 = vpush %v884_v38 }
 0x636   : > { %v891_v40 = vpop.permute.xlu1 %890 }
 0x637   : > { %1210 = vpush %v891_v40 }
 0x664   : > { %s1207_s27 = spop %1206 }
 0x665   : > { %v879_v42 = vstv %s1207_s27  ;;  %s1209_s28 = spop %1208 }
 0x666   : > { %v881_v44 = vmul.f32 %v879_v42, %v1605_v3  ;;  %v886_v45 = vstv %s1209_s28 }
 0x667   : > { %v888_v47 = vmul.f32 %v886_v45, %v1579_v50 }
 0x668   : > { %v882_v46 = vadd.f32 %v881_v44, %v875_v43  ;;  %s1211_s29 = spop %1210 }
 0x669   : > { %v893_v48 = vstv %s1211_s29 }
 0x66a   : > { %v889_v49 = vadd.f32 %v888_v47, %v882_v46  ;;  %v895_v51 = vmul.f32 %v893_v48, %v1622_v13 }
 0x66c   : > { %v896_v52 = vadd.f32 %v895_v51, %v889_v49 }
 0x66e   : > { %897 = vst.msk [vmem:[%s274_s8] sm:$0xff] %vm355_vm0, %v896_v52 }
 0x66f   : > { %1328 = shalt.err (!%p1325_p3)
}
 0x670   : > { %s1329_s24 = scalar_lea.hbm %s1642_s21, 128  ;;  %s1333_s27 = scalar_lea.hbm %s1691_s7, 256 }
 0x671   : > { %p1330_p4 = scmp.ne.s32.totalorder %s1642_s21, %s1329_s24  ;;  %p1334_p7 = scmp.lt.u32.totalorder %s1642_s21, %s1691_s7 }
 0x672   : > { %p1335_p8 = scmp.lt.u32.totalorder %s1333_s27, %s1329_s24  ;;  %p1337_p10 = scmp.lt.u32.totalorder %s1329_s24, %s1642_s21 }
 0x673   : > { %p1331_p5 = pnand %p1330_p4, %p1474_p0 }
 0x674   : > { %p1336_p9 = por %p1335_p8, %p1334_p7 }
 0x675   : > { %p1332_p6 = pneg %p1331_p5 }
 0x676   : > { %p1338_p11 = por %p1337_p10, %p1336_p9 }
 0x678   : > { %p1339_p12 = pnand %p1338_p11, %p1332_p6 }
 0x67a   : > { %1342 = shalt.err (!%p1339_p12)
}
 0x67b   : > { %1214 = dma.vmem_to_hbm [thread:$0]  (%p1474_p0), %s1644_s9, 128, %s1642_s21, %s899_s14  }
 0x67c PF: > { %p1220_p13 = scmp.ge.s32.totalorder %s1379_s12, 2  ;;  %s925_s30 = sand.u32 1, %s1367_s1  }
 0x67d   : > { %s926_s8 = scalar_lea.sflag [#allocation6], %s925_s30 }
 0x67e   : > { %p1217_p1 = pnand %p1220_p13, %p1479_p2 }
 0x680   : > { %1362 = dma.done.wait (!%p1217_p1), %s926_s8, 128  }
 0x681   : > { %1364 = vsyncadd (!%p1217_p1), %s926_s8, 4294967168  ;;  %p27_p3 = scmp.ge.s32.totalorder %s1465_s15, 4   ;;  %s1695_s1 = smov %s1371_s10 }
 0x682   : > { %s1696_s10 = smov %s1375_s11  ;;  %s1697_s11 = smov %s1486_s22 }
 0x683   : > { %s1698_s12 = smov %s1465_s15  ;;  %29 = sbr.rel (!%p27_p3) target bundleno = 28 (0x1c), region = 81 }
 0x68a   :  { %931 = vsyncpa [#allocation6], 1 }
 0x68b   :  { %933 = vsyncpa [#allocation6 + $0x1], 1 }

</bundles_post_ra>
